<compile_context>
chip_gen: v6e
topology: v6e:2x2x1
jax: 0.10.0
libtpu: 0.0.40
codegen_flags: <defaults>
</compile_context>

<pallas_src>
import functools

import jax
import jax.numpy as jnp
from jax.experimental import pallas as pl
from jax.experimental.pallas import tpu as pltpu

LANE = 128


def _round_up(n, m):
    return ((n + m - 1) // m) * m


# ---------------------------------------------------------------------------
# Pallas kernel: fused embedding + 4-layer MLP (eval-mode dropout = identity)
# ---------------------------------------------------------------------------
def _mlp_kernel(x_ref,
                w1n_ref, t_ref, b1_ref,
                w2_ref, b2_ref, w3_ref, b3_ref, w4_ref, b4_ref,
                o_ref, *, n_num, d1):
    bf16 = jnp.bfloat16
    f32 = jnp.float32
    tb = x_ref.shape[0]
    dpad = t_ref.shape[0]  # stacked two-hot table rows (lane-padded to 128)

    # Split the single input stream inside the kernel (no wrapper slices).
    x_num = x_ref[:, :n_num].astype(bf16)                         # [tb, n_num]
    cat1 = x_ref[:, n_num:n_num + 1].astype(jnp.int32)            # [tb, 1]
    cat2 = x_ref[:, n_num + 1:n_num + 2].astype(jnp.int32)        # [tb, 1]

    # Two-hot mask over the stacked table: rows [0, d1) are embed1's fused
    # table, rows [d1, d1+d2) are embed2's.  One compare-chain, one MXU dot.
    iota = jax.lax.broadcasted_iota(jnp.int32, (tb, dpad), 1)
    twohot = ((iota == cat1) | (iota == (cat2 + d1))).astype(bf16)

    # fc1 + relu1:  x_num @ W1_num + twohot @ T + b1
    h = (jnp.dot(x_num, w1n_ref[...], preferred_element_type=f32)
         + jnp.dot(twohot, t_ref[...], preferred_element_type=f32)
         + b1_ref[...])
    h = jnp.maximum(h, 0.0)

    # fc2 + relu2
    h = jnp.dot(h.astype(bf16), w2_ref[...],
                preferred_element_type=f32) + b2_ref[...]
    h = jnp.maximum(h, 0.0)

    # TODO(synk): dropout1/dropout2 are eval-mode identities; training-mode
    # stochastic masking (pltpu.prng_random_bits) not implemented.

    # fc3 + relu3
    h = jnp.dot(h.astype(bf16), w3_ref[...],
                preferred_element_type=f32) + b3_ref[...]
    h = jnp.maximum(h, 0.0)

    # fc4 — w4 is NOT lane-padded, so only the real out_dim columns are
    # written back to HBM (no post-call slice needed).
    o_ref[...] = jnp.dot(h.astype(bf16), w4_ref[...],
                         preferred_element_type=f32) + b4_ref[...]


# ---------------------------------------------------------------------------
# One-time weight preparation: fuse embeddings into fc1, stack into a single
# two-hot table, pad hidden dims to 128 lanes, cast matmul weights to bf16.
# ---------------------------------------------------------------------------
def prepare_fused_params(params):
    f32 = jnp.float32
    bf16 = jnp.bfloat16
    embed1 = params["embed1"].astype(f32)
    embed2 = params["embed2"].astype(f32)
    w1, b1 = params["w1"].astype(f32), params["b1"].astype(f32)
    w2, b2 = params["w2"].astype(f32), params["b2"].astype(f32)
    w3, b3 = params["w3"].astype(f32), params["b3"].astype(f32)
    w4, b4 = params["w4"].astype(f32), params["b4"].astype(f32)

    d1, e1 = embed1.shape
    d2, e2 = embed2.shape
    d_in, hidden = w1.shape
    n_num = d_in - e1 - e2
    out_dim = w4.shape[1]

    h_pad = _round_up(hidden, LANE)
    d_pad = _round_up(d1 + d2, LANE)

    def pad2(a, rows, cols):
        return jnp.pad(a, ((0, rows - a.shape[0]), (0, cols - a.shape[1])))

    # Stacked fused embedding table: rows [0,d1) = embed1 @ W1_e1,
    # rows [d1,d1+d2) = embed2 @ W1_e2, rest zero.
    t1 = embed1 @ w1[n_num:n_num + e1]
    t2 = embed2 @ w1[n_num + e1:]
    t = pad2(jnp.concatenate([t1, t2], axis=0), d_pad, h_pad)

    fused = dict(
        w1n=pad2(w1[:n_num], n_num, h_pad).astype(bf16),
        t=t.astype(bf16),
        w2=pad2(w2, h_pad, h_pad).astype(bf16),
        w3=pad2(w3, h_pad, h_pad).astype(bf16),
        w4=pad2(w4, h_pad, out_dim).astype(bf16),   # no output-column padding
        b1=pad2(b1, 1, h_pad),
        b2=pad2(b2, 1, h_pad),
        b3=pad2(b3, 1, h_pad),
        b4=b4.reshape(1, out_dim),
    )
    return fused, n_num, d1, out_dim


# ---------------------------------------------------------------------------
# Forward-pass factory (mirrors CategoricalClassifier3.forward, eval mode)
# ---------------------------------------------------------------------------
def make_categorical_classifier3(params, *, tb=4096):
    fused, n_num, d1, out_dim = prepare_fused_params(params)
    h_pad = fused["w2"].shape[0]
    d_pad = fused["t"].shape[0]

    kernel = functools.partial(_mlp_kernel, n_num=n_num, d1=d1)

    def forward(x):
        B = x.shape[0]
        assert x.shape[1] == n_num + 2
        x = x.astype(jnp.float32)

        # Tile the batch; cap so the grid keeps >= 2 steps for large B
        # (lets dimension_semantics=("parallel",) use both v7x TensorCores).
        half = _round_up(max(1, (B + 1) // 2), 8)
        tile_b = min(tb, max(8, half), _round_up(B, 8))
        grid = (pl.cdiv(B, tile_b),)

        row = lambda i: (i, 0)       # batch-tiled streams
        const = lambda i: (0, 0)     # VMEM-resident weights/biases

        flops = 2 * B * (n_num * h_pad + d_pad * h_pad
                         + 2 * h_pad * h_pad + h_pad * out_dim)
        wbytes = sum(int(v.size) * v.dtype.itemsize for v in fused.values())
        bytes_accessed = B * ((n_num + 2) * 4 + out_dim * 4) + wbytes

        out = pl.pallas_call(
            kernel,
            out_shape=jax.ShapeDtypeStruct((B, out_dim), jnp.float32),
            grid=grid,
            in_specs=[
                pl.BlockSpec((tile_b, n_num + 2), row),   # single x stream
                pl.BlockSpec(fused["w1n"].shape, const),
                pl.BlockSpec(fused["t"].shape, const),
                pl.BlockSpec(fused["b1"].shape, const),
                pl.BlockSpec(fused["w2"].shape, const),
                pl.BlockSpec(fused["b2"].shape, const),
                pl.BlockSpec(fused["w3"].shape, const),
                pl.BlockSpec(fused["b3"].shape, const),
                pl.BlockSpec(fused["w4"].shape, const),
                pl.BlockSpec(fused["b4"].shape, const),
            ],
            out_specs=pl.BlockSpec((tile_b, out_dim), row),
            compiler_params=pltpu.CompilerParams(
                dimension_semantics=("parallel",)),
            cost_estimate=pl.CostEstimate(
                flops=flops, transcendentals=0,
                bytes_accessed=bytes_accessed),
        )(x,
          fused["w1n"], fused["t"], fused["b1"],
          fused["w2"], fused["b2"], fused["w3"], fused["b3"],
          fused["w4"], fused["b4"])
        return out

    return forward


# ---------------------------------------------------------------------------
# Pure-JAX f32 reference (mirrors the PyTorch module exactly, eval mode)
# ---------------------------------------------------------------------------
def reference_forward(x, params):
    X_num = x[:, :-2]
    c1 = x[:, -2].astype(jnp.int32)
    c2 = x[:, -1].astype(jnp.int32)
    emb1 = params["embed1"][c1]
    emb2 = params["embed2"][c2]
    h = jnp.concatenate([X_num, emb1, emb2], axis=1)
    h = jnp.maximum(h @ params["w1"] + params["b1"], 0.0)
    h = jnp.maximum(h @ params["w2"] + params["b2"], 0.0)
    h = jnp.maximum(h @ params["w3"] + params["b3"], 0.0)
    return h @ params["w4"] + params["b4"]


# ---------------------------------------------------------------------------
# Deterministic parameter init (PyTorch-like shapes; synthetic values)
# ---------------------------------------------------------------------------
def init_params(key, num_input_dim, dictionaries, embed_dims,
                hidden_dim, output_dim):
    keys = jax.random.split(key, 10)
    d_in = num_input_dim + embed_dims[0] + embed_dims[1]

    def lin(kw, kb, fan_in, fan_out):
        bound = 1.0 / jnp.sqrt(fan_in)
        w = jax.random.uniform(kw, (fan_in, fan_out), jnp.float32,
                               -bound, bound)
        b = jax.random.uniform(kb, (1, fan_out), jnp.float32, -bound, bound)
        return w, b

    w1, b1 = lin(keys[0], keys[1], d_in, hidden_dim)
    w2, b2 = lin(keys[2], keys[3], hidden_dim, hidden_dim)
    w3, b3 = lin(keys[4], keys[5], hidden_dim, hidden_dim)
    w4, b4 = lin(keys[6], keys[7], hidden_dim, output_dim)
    embed1 = jax.random.normal(keys[8], (dictionaries[0], embed_dims[0]),
                               jnp.float32)
    embed2 = jax.random.normal(keys[9], (dictionaries[1], embed_dims[1]),
                               jnp.float32)
    return dict(w1=w1, b1=b1, w2=w2, b2=b2, w3=w3, b3=b3, w4=w4, b4=b4,
                embed1=embed1, embed2=embed2)


def _make_inputs(key, batch, num_input_dim, dictionaries):
    kx, kc1, kc2 = jax.random.split(key, 3)
    x_num = jax.random.normal(kx, (batch, num_input_dim), jnp.float32)
    cat1 = jax.random.randint(kc1, (batch, 1), 0, dictionaries[0])
    cat2 = jax.random.randint(kc2, (batch, 1), 0, dictionaries[1])
    return jnp.concatenate(
        [x_num, cat1.astype(jnp.float32), cat2.astype(jnp.float32)], axis=1)


if __name__ == "__main__":
    # Small, module-consistent shapes.
    num_input_dim = 16
    dictionaries = (10, 7)
    embed_dims = (8, 8)
    hidden_dim = 32
    output_dim = 4

    key = jax.random.PRNGKey(0)
    kp, kx1, kx2 = jax.random.split(key, 3)

    params = init_params(kp, num_input_dim, dictionaries, embed_dims,
                         hidden_dim, output_dim)
    forward = make_categorical_classifier3(params, tb=4096)

    # Case 1: small batch, single tile.
    x = _make_inputs(kx1, 8, num_input_dim, dictionaries)
    out = forward(x)
    jax.block_until_ready(out)
    assert out.shape == (8, output_dim)
    err = float(jnp.max(jnp.abs(out - reference_forward(x, params))))
    assert err < 0.1, f"max abs error vs f32 reference: {err}"

    # Case 2: batch not a multiple of the tile (exercises partial last tile
    # discarded by the masked output-block writeback).
    x2 = _make_inputs(kx2, 20, num_input_dim, dictionaries)
    out2 = forward(x2)
    jax.block_until_ready(out2)
    assert out2.shape == (20, output_dim)
    err2 = float(jnp.max(jnp.abs(out2 - reference_forward(x2, params))))
    assert err2 < 0.1, f"max abs error vs f32 reference (partial tile): {err2}"

    print("KERNEL_OK")
</pallas_src>

<mosaic_0001>
module attributes {stable_mosaic.version = 11 : i64} {
  func.func @_mlp_kernel(%arg0: i32, %arg1: memref<8x18xf32, #tpu.memory_space<vmem>>, %arg2: memref<16x128xbf16, #tpu.memory_space<vmem>>, %arg3: memref<128x128xbf16, #tpu.memory_space<vmem>>, %arg4: memref<1x128xf32, #tpu.memory_space<vmem>>, %arg5: memref<128x128xbf16, #tpu.memory_space<vmem>>, %arg6: memref<1x128xf32, #tpu.memory_space<vmem>>, %arg7: memref<128x128xbf16, #tpu.memory_space<vmem>>, %arg8: memref<1x128xf32, #tpu.memory_space<vmem>>, %arg9: memref<128x4xbf16, #tpu.memory_space<vmem>>, %arg10: memref<1x4xf32, #tpu.memory_space<vmem>>, %arg11: memref<8x4xf32, #tpu.memory_space<vmem>>) attributes {dimension_semantics = [#tpu.dimension_semantics<parallel>], iteration_bounds = array<i64: 1>, scalar_prefetch = 0 : i64, scratch_operands = 0 : i64, tpu.core_type = #tpu.core_type<tc>, window_params = [{transform_indices = @transform_0, window_bounds = array<i64: 8, 18>}, {pipeline_mode = #tpu.pipeline_mode<synchronous>, transform_indices = @transform_1, window_bounds = array<i64: 16, 128>}, {pipeline_mode = #tpu.pipeline_mode<synchronous>, transform_indices = @transform_2, window_bounds = array<i64: 128, 128>}, {pipeline_mode = #tpu.pipeline_mode<synchronous>, transform_indices = @transform_3, window_bounds = array<i64: 1, 128>}, {pipeline_mode = #tpu.pipeline_mode<synchronous>, transform_indices = @transform_4, window_bounds = array<i64: 128, 128>}, {pipeline_mode = #tpu.pipeline_mode<synchronous>, transform_indices = @transform_5, window_bounds = array<i64: 1, 128>}, {pipeline_mode = #tpu.pipeline_mode<synchronous>, transform_indices = @transform_6, window_bounds = array<i64: 128, 128>}, {pipeline_mode = #tpu.pipeline_mode<synchronous>, transform_indices = @transform_7, window_bounds = array<i64: 1, 128>}, {pipeline_mode = #tpu.pipeline_mode<synchronous>, transform_indices = @transform_8, window_bounds = array<i64: 128, 4>}, {pipeline_mode = #tpu.pipeline_mode<synchronous>, transform_indices = @transform_9, window_bounds = array<i64: 1, 4>}, {transform_indices = @transform_10, window_bounds = array<i64: 8, 4>}]} {
    %c0 = arith.constant 0 : index
    %c0_0 = arith.constant 0 : index
    %0 = vector.load %arg1[%c0, %c0_0] : memref<8x18xf32, #tpu.memory_space<vmem>>, vector<8x16xf32>
    %1 = arith.truncf %0 : vector<8x16xf32> to vector<8x16xbf16>
    %c0_1 = arith.constant 0 : index
    %c16 = arith.constant 16 : index
    %2 = vector.load %arg1[%c0_1, %c16] : memref<8x18xf32, #tpu.memory_space<vmem>>, vector<8x1xf32>
    %3 = arith.fptosi %2 : vector<8x1xf32> to vector<8x1xi32>
    %c0_2 = arith.constant 0 : index
    %c17 = arith.constant 17 : index
    %4 = vector.load %arg1[%c0_2, %c17] : memref<8x18xf32, #tpu.memory_space<vmem>>, vector<8x1xf32>
    %5 = arith.fptosi %4 : vector<8x1xf32> to vector<8x1xi32>
    %6 = tpu.iota {dimensions = array<i32: 1>} : vector<8x128xi32>
    %7 = vector.broadcast %3 : vector<8x1xi32> to vector<8x128xi32>
    %8 = arith.cmpi eq, %6, %7 : vector<8x128xi32>
    %c10_i32 = arith.constant 10 : i32
    %9 = vector.broadcast %c10_i32 : i32 to vector<8x1xi32>
    %10 = arith.addi %5, %9 : vector<8x1xi32>
    %11 = vector.broadcast %10 : vector<8x1xi32> to vector<8x128xi32>
    %12 = arith.cmpi eq, %6, %11 : vector<8x128xi32>
    %13 = arith.ori %8, %12 : vector<8x128xi1>
    %14 = arith.extui %13 : vector<8x128xi1> to vector<8x128xi32>
    %15 = arith.sitofp %14 : vector<8x128xi32> to vector<8x128xf32>
    %16 = arith.truncf %15 : vector<8x128xf32> to vector<8x128xbf16>
    %c0_3 = arith.constant 0 : index
    %c0_4 = arith.constant 0 : index
    %17 = vector.load %arg2[%c0_3, %c0_4] : memref<16x128xbf16, #tpu.memory_space<vmem>>, vector<16x128xbf16>
    %cst = arith.constant dense<0.000000e+00> : vector<8x128xf32>
    %18 = tpu.matmul %1, %17, %cst {dimension_numbers = #tpu.dot_dimension_numbers<[1], [0], [0], [1], [0, 0, 1, 1], [], []>} : vector<8x16xbf16>, vector<16x128xbf16>, vector<8x128xf32> -> vector<8x128xf32>
    %c0_5 = arith.constant 0 : index
    %c0_6 = arith.constant 0 : index
    %19 = vector.load %arg3[%c0_5, %c0_6] : memref<128x128xbf16, #tpu.memory_space<vmem>>, vector<128x128xbf16>
    %cst_7 = arith.constant dense<0.000000e+00> : vector<8x128xf32>
    %20 = tpu.matmul %16, %19, %cst_7 {dimension_numbers = #tpu.dot_dimension_numbers<[1], [0], [0], [1], [0, 0, 1, 1], [], []>} : vector<8x128xbf16>, vector<128x128xbf16>, vector<8x128xf32> -> vector<8x128xf32>
    %21 = arith.addf %18, %20 : vector<8x128xf32>
    %c0_8 = arith.constant 0 : index
    %c0_9 = arith.constant 0 : index
    %22 = vector.load %arg4[%c0_8, %c0_9] : memref<1x128xf32, #tpu.memory_space<vmem>>, vector<1x128xf32>
    %23 = vector.broadcast %22 : vector<1x128xf32> to vector<8x128xf32>
    %24 = arith.addf %21, %23 : vector<8x128xf32>
    %cst_10 = arith.constant 0.000000e+00 : f32
    %25 = vector.broadcast %cst_10 : f32 to vector<8x128xf32>
    %26 = arith.maximumf %24, %25 : vector<8x128xf32>
    %27 = arith.truncf %26 : vector<8x128xf32> to vector<8x128xbf16>
    %c0_11 = arith.constant 0 : index
    %c0_12 = arith.constant 0 : index
    %28 = vector.load %arg5[%c0_11, %c0_12] : memref<128x128xbf16, #tpu.memory_space<vmem>>, vector<128x128xbf16>
    %cst_13 = arith.constant dense<0.000000e+00> : vector<8x128xf32>
    %29 = tpu.matmul %27, %28, %cst_13 {dimension_numbers = #tpu.dot_dimension_numbers<[1], [0], [0], [1], [0, 0, 1, 1], [], []>} : vector<8x128xbf16>, vector<128x128xbf16>, vector<8x128xf32> -> vector<8x128xf32>
    %c0_14 = arith.constant 0 : index
    %c0_15 = arith.constant 0 : index
    %30 = vector.load %arg6[%c0_14, %c0_15] : memref<1x128xf32, #tpu.memory_space<vmem>>, vector<1x128xf32>
    %31 = vector.broadcast %30 : vector<1x128xf32> to vector<8x128xf32>
    %32 = arith.addf %29, %31 : vector<8x128xf32>
    %cst_16 = arith.constant 0.000000e+00 : f32
    %33 = vector.broadcast %cst_16 : f32 to vector<8x128xf32>
    %34 = arith.maximumf %32, %33 : vector<8x128xf32>
    %35 = arith.truncf %34 : vector<8x128xf32> to vector<8x128xbf16>
    %c0_17 = arith.constant 0 : index
    %c0_18 = arith.constant 0 : index
    %36 = vector.load %arg7[%c0_17, %c0_18] : memref<128x128xbf16, #tpu.memory_space<vmem>>, vector<128x128xbf16>
    %cst_19 = arith.constant dense<0.000000e+00> : vector<8x128xf32>
    %37 = tpu.matmul %35, %36, %cst_19 {dimension_numbers = #tpu.dot_dimension_numbers<[1], [0], [0], [1], [0, 0, 1, 1], [], []>} : vector<8x128xbf16>, vector<128x128xbf16>, vector<8x128xf32> -> vector<8x128xf32>
    %c0_20 = arith.constant 0 : index
    %c0_21 = arith.constant 0 : index
    %38 = vector.load %arg8[%c0_20, %c0_21] : memref<1x128xf32, #tpu.memory_space<vmem>>, vector<1x128xf32>
    %39 = vector.broadcast %38 : vector<1x128xf32> to vector<8x128xf32>
    %40 = arith.addf %37, %39 : vector<8x128xf32>
    %cst_22 = arith.constant 0.000000e+00 : f32
    %41 = vector.broadcast %cst_22 : f32 to vector<8x128xf32>
    %42 = arith.maximumf %40, %41 : vector<8x128xf32>
    %43 = arith.truncf %42 : vector<8x128xf32> to vector<8x128xbf16>
    %c0_23 = arith.constant 0 : index
    %c0_24 = arith.constant 0 : index
    %44 = vector.load %arg9[%c0_23, %c0_24] : memref<128x4xbf16, #tpu.memory_space<vmem>>, vector<128x4xbf16>
    %cst_25 = arith.constant dense<0.000000e+00> : vector<8x4xf32>
    %45 = tpu.matmul %43, %44, %cst_25 {dimension_numbers = #tpu.dot_dimension_numbers<[1], [0], [0], [1], [0, 0, 1, 1], [], []>} : vector<8x128xbf16>, vector<128x4xbf16>, vector<8x4xf32> -> vector<8x4xf32>
    %c0_26 = arith.constant 0 : index
    %c0_27 = arith.constant 0 : index
    %46 = vector.load %arg10[%c0_26, %c0_27] : memref<1x4xf32, #tpu.memory_space<vmem>>, vector<1x4xf32>
    %47 = vector.broadcast %46 : vector<1x4xf32> to vector<8x4xf32>
    %48 = arith.addf %45, %47 : vector<8x4xf32>
    %c0_28 = arith.constant 0 : index
    %c0_29 = arith.constant 0 : index
    %49 = vector.load %arg11[%c0_28, %c0_29] : memref<8x4xf32, #tpu.memory_space<vmem>>, vector<8x4xf32>
    tpu.vector_store %arg11[%c0_28, %c0_29], %48 {strides = array<i32>} : memref<8x4xf32, #tpu.memory_space<vmem>>, vector<8x4xf32>,
    return
  }
  func.func @transform_0(%arg0: i32) -> (i32, i32) {
    %c0_i32 = arith.constant 0 : i32
    %c0_i32_0 = arith.constant 0 : i32
    return %arg0, %c0_i32 : i32, i32
  }
  func.func @transform_1(%arg0: i32) -> (i32, i32) {
    %c0_i32 = arith.constant 0 : i32
    %c0_i32_0 = arith.constant 0 : i32
    %c0_i32_1 = arith.constant 0 : i32
    return %c0_i32, %c0_i32_0 : i32, i32
  }
  func.func @transform_2(%arg0: i32) -> (i32, i32) {
    %c0_i32 = arith.constant 0 : i32
    %c0_i32_0 = arith.constant 0 : i32
    %c0_i32_1 = arith.constant 0 : i32
    return %c0_i32, %c0_i32_0 : i32, i32
  }
  func.func @transform_3(%arg0: i32) -> (i32, i32) {
    %c0_i32 = arith.constant 0 : i32
    %c0_i32_0 = arith.constant 0 : i32
    %c0_i32_1 = arith.constant 0 : i32
    return %c0_i32, %c0_i32_0 : i32, i32
  }
  func.func @transform_4(%arg0: i32) -> (i32, i32) {
    %c0_i32 = arith.constant 0 : i32
    %c0_i32_0 = arith.constant 0 : i32
    %c0_i32_1 = arith.constant 0 : i32
    return %c0_i32, %c0_i32_0 : i32, i32
  }
  func.func @transform_5(%arg0: i32) -> (i32, i32) {
    %c0_i32 = arith.constant 0 : i32
    %c0_i32_0 = arith.constant 0 : i32
    %c0_i32_1 = arith.constant 0 : i32
    return %c0_i32, %c0_i32_0 : i32, i32
  }
  func.func @transform_6(%arg0: i32) -> (i32, i32) {
    %c0_i32 = arith.constant 0 : i32
    %c0_i32_0 = arith.constant 0 : i32
    %c0_i32_1 = arith.constant 0 : i32
    return %c0_i32, %c0_i32_0 : i32, i32
  }
  func.func @transform_7(%arg0: i32) -> (i32, i32) {
    %c0_i32 = arith.constant 0 : i32
    %c0_i32_0 = arith.constant 0 : i32
    %c0_i32_1 = arith.constant 0 : i32
    return %c0_i32, %c0_i32_0 : i32, i32
  }
  func.func @transform_8(%arg0: i32) -> (i32, i32) {
    %c0_i32 = arith.constant 0 : i32
    %c0_i32_0 = arith.constant 0 : i32
    %c0_i32_1 = arith.constant 0 : i32
    return %c0_i32, %c0_i32_0 : i32, i32
  }
  func.func @transform_9(%arg0: i32) -> (i32, i32) {
    %c0_i32 = arith.constant 0 : i32
    %c0_i32_0 = arith.constant 0 : i32
    %c0_i32_1 = arith.constant 0 : i32
    return %c0_i32, %c0_i32_0 : i32, i32
  }
  func.func @transform_10(%arg0: i32) -> (i32, i32) {
    %c0_i32 = arith.constant 0 : i32
    %c0_i32_0 = arith.constant 0 : i32
    return %arg0, %c0_i32 : i32, i32
  }
}

</mosaic_0001>

<bundles_post_ra>
// kernel: tpu_custom_call.1
= control target key start
LH: loop header
LB: loop body
LE: loop exit
PB: predicated region body
PF: predicated region fallthrough
CT: control target
= control target key end

     0   :  { %15 = vsyncpa [#allocation3], 0  ;;  %s1111_s0 = inlined_call_operand.hbm [shape: f32[8,18], index: 0, kind: input, shape index: {}]   ;;  %s1112_s1 = inlined_call_operand.hbm [shape: bf16[16,128], index: 1, kind: input, shape index: {}]   ;;  %s1113_s2 = inlined_call_operand.vmem [shape: bf16[128,128], index: 2, kind: input, shape index: {}]   ;;  %s1114_s3 = inlined_call_operand.vmem [shape: f32[1,128], index: 3, kind: input, shape index: {}]   ;;  %s1115_s4 = inlined_call_operand.hbm [shape: bf16[128,128], index: 4, kind: input, shape index: {}]   ;;  %s1116_s5 = inlined_call_operand.vmem [shape: f32[1,128], index: 5, kind: input, shape index: {}]   ;;  %s1117_s6 = inlined_call_operand.hbm [shape: bf16[128,128], index: 6, kind: input, shape index: {}]   ;;  %s1118_s7 = inlined_call_operand.vmem [shape: f32[1,128], index: 7, kind: input, shape index: {}]   ;;  %s1119_s8 = inlined_call_operand.vmem [shape: bf16[128,4], index: 8, kind: input, shape index: {}]   ;;  %s1120_s9 = inlined_call_operand.vmem [shape: f32[1,4], index: 9, kind: input, shape index: {}]   ;;  %s1121_s10 = inlined_call_operand.vmem [shape: f32[8,4], index: 10, kind: output, shape index: {}]  }
   0x1   :  { %16 = vsyncpa [#allocation5], 0 }
   0x2   :  { %17 = vsyncpa [#allocation8], 0  ;;  %s918_s13 = smov [#allocation4]  }
   0x3   :  { %s33_s14 = sshll.u32 %s918_s13, 4  ;;  %s34_s14 = int_to_ptr.vmem [resolvable:$true] %s33_s14 }
   0x4   :  { %s840_s15 = scalar_lea.vmem %s34_s14, 128  ;;  %p845_p1 = scmp.lt.s32.totalorder %s34_s14, %s34_s14 }
   0x5   :  { %p841_p0 = scmp.ne.s32.totalorder %s34_s14, %s840_s15  ;;  %p846_p2 = scmp.lt.s32.totalorder %s840_s15, %s840_s15 }
   0x7   :  { %p847_p3 = por %p846_p2, %p845_p1 }
   0x9   :  { %p848_p4 = pnand %p847_p3, %p841_p0 }
   0xb   :  { %851 = shalt.err (!%p848_p4)
}
   0xc   :  { %s919_s16 = smov 64   ;;  %s920_s17 = smov 4  }
   0xd   :  { %39 = dma.hbm_to_vmem [thread:$0]  %s1112_s1, 128, %s34_s14, [#allocation5], %s919_s16, %s919_s16, %s920_s17  }
   0xe   :  { %s921_s20 = smov [#allocation2]   ;;  %s922_s22 = smov [#allocation6]  }
   0xf   :  { %s24_s21 = sshll.u32 %s921_s20, 4  ;;  %s49_s23 = sshll.u32 %s922_s22, 4  ;;  %s25_s21 = int_to_ptr.vmem [resolvable:$true] %s24_s21  ;;  %s50_s23 = int_to_ptr.vmem [resolvable:$true] %s49_s23 }
  0x10   :  { %s860_s24 = scalar_lea.vmem %s25_s21, 128  ;;  %p865_p6 = scmp.lt.s32.totalorder %s25_s21, %s25_s21 }
  0x11   :  { %p861_p5 = scmp.ne.s32.totalorder %s25_s21, %s860_s24  ;;  %p866_p7 = scmp.lt.s32.totalorder %s860_s24, %s860_s24 }
  0x13   :  { %p867_p8 = por %p866_p7, %p865_p6 }
  0x15   :  { %p868_p9 = pnand %p867_p8, %p861_p5 }
  0x17   :  { %871 = shalt.err (!%p868_p9)
}
  0x18   :  { %27 = dma.hbm_to_vmem [thread:$0]  %s1111_s0, 128, %s25_s21, [#allocation3]  }
  0x19   :  { %s880_s27 = scalar_lea.vmem %s50_s23, 1024  ;;  %p885_p11 = scmp.lt.s32.totalorder %s50_s23, %s50_s23 }
  0x1a   :  { %p881_p10 = scmp.ne.s32.totalorder %s50_s23, %s880_s27  ;;  %p886_p12 = scmp.lt.s32.totalorder %s880_s27, %s880_s27 }
  0x1c   :  { %p887_p13 = por %p886_p12, %p885_p11 }
  0x1e   :  { %p888_p0 = pnand %p887_p13, %p881_p10 }
  0x20   :  { %891 = shalt.err (!%p888_p0)
}
  0x21   :  { %55 = dma.hbm_to_vmem [thread:$0]  %s1115_s4, 1024, %s50_s23, [#allocation5], %s919_s16, %s919_s16, %s920_s17  }
  0x22   :  { %s923_s29 = smov [#allocation7]  }
  0x23   :  { %s63_s30 = sshll.u32 %s923_s29, 4  ;;  %s64_s30 = int_to_ptr.vmem [resolvable:$true] %s63_s30 }
  0x24   :  { %s900_s11 = scalar_lea.vmem %s64_s30, 1024  ;;  %p905_p2 = scmp.lt.s32.totalorder %s64_s30, %s64_s30 }
  0x25   :  { %p901_p1 = scmp.ne.s32.totalorder %s64_s30, %s900_s11  ;;  %p906_p3 = scmp.lt.s32.totalorder %s900_s11, %s900_s11 }
  0x27   :  { %p907_p4 = por %p906_p3, %p905_p2 }
  0x29   :  { %p908_p5 = pnand %p907_p4, %p901_p1 }
  0x2b   :  { %911 = shalt.err (!%p908_p5)
}
  0x2c   :  { %69 = dma.hbm_to_vmem [thread:$0]  %s1117_s6, 1024, %s64_s30, [#allocation8], %s919_s16, %s919_s16, %s920_s17  }
  0x2d   :  { %912 = dma.done.wait [#allocation3], 128  }
  0x2e   :  { %913 = vsyncadd [#allocation3], 4294967168 }
  0x2f   :  { %914 = dma.done.wait [#allocation5], 1152  }
  0x30   :  { %915 = vsyncadd [#allocation5], 4294966144 }
  0x31   :  { %916 = dma.done.wait [#allocation8], 1024  }
  0x32   :  { %917 = vsyncadd [#allocation8], 4294966272  ;;  %v924_v0 = vmov 16   ;;  %v925_v1 = vmov 0.0   ;;  %v89_v2 = vld [vmem:[#allocation2] sm:$0xff]  ;;  %v799_v4 = vld [vmem:[%s1113_s2 + $0x38] sm:$0xff]   ;;  %v92_v23 = vlaneseq }
  0x33   :  { %797 = vset.pattern.permute.xlu0 %v924_v0  ;;  %698 = vmatprep.subr.bf16.mxu0 %v925_v1  ;;  %v784_v3 = vtrunc.f32 %v89_v2  ;;  %vm926_vm0 = vmmov 0   ;;  %v800_v6 = vld [vmem:[%s1113_s2 + $0x30] sm:$0xff]   ;;  %v801_v8 = vld [vmem:[%s1113_s2 + $0x28] sm:$0xff]   ;;  %v90_v10 = vpack.c.bf16 %v89_v2, %v89_v2  ;;  %v927_v11 = vmov 17   ;;  %v802_v13 = vld [vmem:[%s1113_s2 + $0x20] sm:$0xff]  }
  0x34   :  { %718 = vmatprep.subr.bf16.mxu1 %v925_v1  ;;  %720 = vmatprep.mubr.msk.bf16.mxu1 %vm926_vm0, %v925_v1  ;;  %v805_v9 = vld [vmem:[#allocation4] sm:$0xff]   ;;  %vm219_vm1 = vcmask 130048   ;;  %v803_v14 = vld [vmem:[%s1113_s2 + $0x18] sm:$0xff]   ;;  %v809_v15 = vld [vmem:[#allocation6 + $0x30] sm:$0xff]   ;;  %v93_v25 = vand.u32 127, %v92_v23  ;;  %vm610_vm6 = vcmask 31744  }
  0x35   :  { %714 = vmatprep.mubr.msk.bf16.mxu0 %vm926_vm0, %v925_v1  ;;  %v785_v5 = vcvt.f32.s32 %v784_v3  ;;  %699 = vmatpush3.bf16.msra.mxu0 %v799_v4  ;;  %v808_v12 = vld [vmem:[#allocation6 + $0x38] sm:$0xff]   ;;  %v810_v16 = vld [vmem:[#allocation6 + $0x28] sm:$0xff]   ;;  %v804_v17 = vld [vmem:[%s1113_s2 + $0x10] sm:$0xff]   ;;  %v928_v27 = vmov 1.0|1.0  }
  0x36   :  { %700 = vmatprep.subr.bf16.mxu0 %v925_v1  ;;  %719 = vmatpush3.bf16.msra.mxu1 %v805_v9  ;;  %v811_v18 = vld [vmem:[#allocation6 + $0x20] sm:$0xff]   ;;  %v806_v19 = vld [vmem:[%s1113_s2 + $0x8] sm:$0xff]   ;;  %v807_v20 = vld [vmem:[%s1113_s2] sm:$0xff]  }
  0x37   :  { %95 = vperm.xlu0 %797, %v785_v5   ;;  %v98_v7 = vadd.s32 10, %v785_v5  ;;  %724 = vmatprep.subr.bf16.mxu1 %v925_v1  ;;  %v812_v21 = vld [vmem:[#allocation6 + $0x18] sm:$0xff]   ;;  %v813_v22 = vld [vmem:[#allocation6 + $0x10] sm:$0xff]   ;;  %v814_v28 = vld [vmem:[#allocation6 + $0x8] sm:$0xff]  }
  0x38   :  { %v815_v30 = vld [vmem:[#allocation6] sm:$0xff]   ;;  %v816_v34 = vld [vmem:[#allocation7 + $0x38] sm:$0xff]   ;;  %v817_v35 = vld [vmem:[#allocation7 + $0x30] sm:$0xff]  }
  0x39   :  { %701 = vmatpush3.bf16.msra.mxu0 %v800_v6  ;;  %721 = vmatmul.mubr.msk.bf16.vlgmr.msra.gmra.mxu1 %vm219_vm1, %v90_v10  ;;  %v818_v36 = vld [vmem:[#allocation7 + $0x28] sm:$0xff]   ;;  %v819_v37 = vld [vmem:[#allocation7 + $0x20] sm:$0xff]   ;;  %v820_v38 = vld [vmem:[#allocation7 + $0x18] sm:$0xff]  }
  0x3a   :  { %702 = vmatprep.subr.bf16.mxu0 %v925_v1  ;;  %725 = vmatpush3.bf16.msra.mxu1 %v808_v12  ;;  %v821_v39 = vld [vmem:[#allocation7 + $0x10] sm:$0xff]   ;;  %v822_v49 = vld [vmem:[#allocation7 + $0x8] sm:$0xff]   ;;  %v823_v50 = vld [vmem:[#allocation7] sm:$0xff]  }
  0x3b   :  { %798 = vset.pattern.permute.xlu0 %v927_v11  ;;  %740 = vmatprep.mubr.msk.bf16.mxu1 %vm926_vm0, %v925_v1  ;;  %v632_v41 = vld [vmem:[%s1114_s3] ss:$0 sm:$0xff]  ;;  %v824_v51 = vld [vmem:[%s1119_s8 + $0x38] sm:$0xff]   ;;  %v825_v52 = vld [vmem:[%s1119_s8 + $0x30] sm:$0xff]  }
  0x3c   :  { %100 = vperm.xlu0 %798, %v98_v7   ;;  %726 = vmatprep.subr.bf16.mxu1 %v925_v1  ;;  %v826_v53 = vld [vmem:[%s1119_s8 + $0x28] sm:$0xff]   ;;  %v827_v54 = vld [vmem:[%s1119_s8 + $0x20] sm:$0xff]   ;;  %v828_v55 = vld [vmem:[%s1119_s8 + $0x18] sm:$0xff]  }
  0x3d   :  { %703 = vmatpush3.bf16.msra.mxu0 %v801_v8  ;;  %v829_v56 = vld [vmem:[%s1119_s8 + $0x10] sm:$0xff]   ;;  %v633_v57 = vld [vmem:[%s1116_s5] ss:$0 sm:$0xff]  ;;  %v830_v2 = vld [vmem:[%s1119_s8 + $0x8] sm:$0xff]  }
  0x3e   :  { %704 = vmatprep.subr.bf16.mxu0 %v925_v1  ;;  %727 = vmatpush3.bf16.msra.mxu1 %v809_v15  ;;  %v831_v3 = vld [vmem:[%s1119_s8] sm:$0xff]  }
  0x3f   :  { %728 = vmatprep.subr.bf16.mxu1 %v925_v1  ;;  %v642_v4 = vld [vmem:[%s1118_s7] ss:$0 sm:$0xff] }
  0x41   :  { %705 = vmatpush3.bf16.msra.mxu0 %v802_v13 }
  0x42   :  { %706 = vmatprep.subr.bf16.mxu0 %v925_v1  ;;  %729 = vmatpush3.bf16.msra.mxu1 %v810_v16 }
  0x43   :  { %730 = vmatprep.subr.bf16.mxu1 %v925_v1 }
  0x45   :  { %707 = vmatpush3.bf16.msra.mxu0 %v803_v14 }
  0x46   :  { %708 = vmatprep.subr.bf16.mxu0 %v925_v1  ;;  %731 = vmatpush3.bf16.msra.mxu1 %v811_v18 }
  0x47   :  { %732 = vmatprep.subr.bf16.mxu1 %v925_v1 }
  0x49   :  { %709 = vmatpush3.bf16.msra.mxu0 %v804_v17 }
  0x4a   :  { %710 = vmatprep.subr.bf16.mxu0 %v925_v1  ;;  %733 = vmatpush3.bf16.msra.mxu1 %v812_v21 }
  0x4b   :  { %734 = vmatprep.subr.bf16.mxu1 %v925_v1 }
  0x4d   :  { %711 = vmatpush3.bf16.msra.mxu0 %v806_v19 }
  0x4e   :  { %712 = vmatprep.subr.bf16.mxu0 %v925_v1  ;;  %735 = vmatpush3.bf16.msra.mxu1 %v813_v22 }
  0x4f   :  { %736 = vmatprep.subr.bf16.mxu1 %v925_v1 }
  0x51   :  { %713 = vmatpush3.bf16.msra.mxu0 %v807_v20 }
  0x52   :  { %744 = vmatprep.subr.bf16.mxu0 %v925_v1  ;;  %737 = vmatpush3.bf16.msra.mxu1 %v814_v28 }
  0x53   :  { %738 = vmatprep.subr.bf16.mxu1 %v925_v1 }
  0x56   :  { %739 = vmatpush3.bf16.msra.mxu1 %v815_v30 }
  0x57   :  { %764 = vmatprep.subr.bf16.mxu1 %v925_v1 }
  0xb2   :  { %v96_v24 = vpop.permute.xlu0 %95 }
  0xb3   :  { %vm97_vm2 = vcmp.eq.s32.totalorder %v93_v25, %v96_v24 }
  0xb7   :  { %v101_v26 = vpop.permute.xlu0 %100 }
  0xb8   :  { %vm102_vm3 = vcmp.eq.s32.totalorder %v93_v25, %v101_v26 }
  0xb9   :  { %vm103_vm4 = vmor %vm97_vm2, %vm102_vm3 }
  0xba   :  { %vm628_vm5 = vmpackc.low %vm103_vm4, %vm103_vm4 }
  0xbb   :  { %715 = vmatmul.mubr.msk.bf16.vlgmr.msra.gmra.mxu0 %vm628_vm5, %v928_v27 }
  0xbc   :  { %760 = vmatprep.mubr.msk.bf16.mxu0 %vm926_vm0, %v925_v1  ;;  %745 = vmatpush3.bf16.msra.mxu0 %v816_v34 }
  0xbd   :  { %746 = vmatprep.subr.bf16.mxu0 %v925_v1 }
  0xc0   :  { %747 = vmatpush3.bf16.msra.mxu0 %v817_v35 }
  0xc1   :  { %748 = vmatprep.subr.bf16.mxu0 %v925_v1 }
  0xc4   :  { %749 = vmatpush3.bf16.msra.mxu0 %v818_v36 }
  0xc5   :  { %750 = vmatprep.subr.bf16.mxu0 %v925_v1 }
  0xc8   :  { %751 = vmatpush3.bf16.msra.mxu0 %v819_v37 }
  0xc9   :  { %752 = vmatprep.subr.bf16.mxu0 %v925_v1 }
  0xcc   :  { %753 = vmatpush3.bf16.msra.mxu0 %v820_v38 }
  0xcd   :  { %754 = vmatprep.subr.bf16.mxu0 %v925_v1 }
  0xd0   :  { %755 = vmatpush3.bf16.msra.mxu0 %v821_v39 }
  0xd1   :  { %756 = vmatprep.subr.bf16.mxu0 %v925_v1 }
  0xd4   :  { %757 = vmatpush3.bf16.msra.mxu0 %v822_v49 }
  0xd5   :  { %758 = vmatprep.subr.bf16.mxu0 %v925_v1 }
  0xd8   :  { %759 = vmatpush3.bf16.msra.mxu0 %v823_v50 }
  0xf9   :  { %v257_v29 = vpop.f32.mrf.mxu1 }
  0xfb   :  { %v722_v31 = vpop.f32.mrf.mxu1 }
  0xfd   :  { %v260_v32 = vpop.f32.mrf.mxu1 }
  0xff   :  { %v723_v33 = vpop.f32.mrf.mxu1 }
 0x17b   :  { %v207_v40 = vpop.f32.mrf.mxu0 }
 0x17c   :  { %v258_v42 = vadd.f32 %v257_v29, %v207_v40 }
 0x17d   :  { %v716_v43 = vpop.f32.mrf.mxu0 }
 0x17e   :  { %v270_v44 = vadd.f32 %v632_v41, %v258_v42 }
 0x17f   :  { %v210_v45 = vpop.f32.mrf.mxu0 }
 0x180   :  { %v271_v46 = vmax.f32 %v270_v44, 0.0 }
 0x181   :  { %v717_v47 = vpop.f32.mrf.mxu0 }
 0x182   :  { %v272_v48 = vpack.c.bf16 %v271_v46, %v271_v46 }
 0x184   :  { %741 = vmatmul.mubr.bf16.vlgmr.msra.gmra.mxu1 %v272_v48 }
 0x185   :  { %780 = vmatprep.mubr.msk.bf16.mxu1 %vm926_vm0, %v925_v1  ;;  %765 = vmatpush3.bf16.msra.mxu1 %v824_v51 }
 0x186   :  { %766 = vmatprep.subr.bf16.mxu1 %v925_v1 }
 0x189   :  { %767 = vmatpush3.bf16.msra.mxu1 %v825_v52 }
 0x18a   :  { %768 = vmatprep.subr.bf16.mxu1 %v925_v1 }
 0x18d   :  { %769 = vmatpush3.bf16.msra.mxu1 %v826_v53 }
 0x18e   :  { %770 = vmatprep.subr.bf16.mxu1 %v925_v1 }
 0x191   :  { %771 = vmatpush3.bf16.msra.mxu1 %v827_v54 }
 0x192   :  { %772 = vmatprep.subr.bf16.mxu1 %v925_v1 }
 0x195   :  { %773 = vmatpush3.bf16.msra.mxu1 %v828_v55 }
 0x196   :  { %774 = vmatprep.subr.bf16.mxu1 %v925_v1 }
 0x199   :  { %775 = vmatpush3.bf16.msra.mxu1 %v829_v56 }
 0x19a   :  { %776 = vmatprep.subr.bf16.mxu1 %v925_v1 }
 0x19d   :  { %777 = vmatpush3.bf16.msra.mxu1 %v830_v2 }
 0x19e   :  { %778 = vmatprep.subr.bf16.mxu1 %v925_v1  ;;  %v651_v1 = vld [vmem:[%s1120_s9] ss:$0 sm:$0xff] }
 0x1a1   :  { %779 = vmatpush3.bf16.msra.mxu1 %v831_v3 }
 0x244   :  { %v378_v58 = vpop.f32.mrf.mxu1 }
 0x245   :  { %v379_v59 = vadd.f32 %v633_v57, %v378_v58 }
 0x246   :  { %v742_v60 = vpop.f32.mrf.mxu1 }
 0x247   :  { %v384_v61 = vmax.f32 %v379_v59, 0.0 }
 0x248   :  { %v381_v62 = vpop.f32.mrf.mxu1 }
 0x249   :  { %v385_v63 = vpack.c.bf16 %v384_v61, %v384_v61 }
 0x24a   :  { %v743_v0 = vpop.f32.mrf.mxu1 }
 0x24b   :  { %761 = vmatmul.mubr.bf16.vlgmr.msra.gmra.mxu0 %v385_v63 }
 0x30b   :  { %v491_v5 = vpop.f32.mrf.mxu0 }
 0x30c   :  { %v492_v6 = vadd.f32 %v642_v4, %v491_v5 }
 0x30d   :  { %v762_v7 = vpop.f32.mrf.mxu0 }
 0x30e   :  { %v497_v8 = vmax.f32 %v492_v6, 0.0 }
 0x30f   :  { %v494_v9 = vpop.f32.mrf.mxu0 }
 0x310   :  { %v498_v10 = vpack.c.bf16 %v497_v8, %v497_v8 }
 0x311   :  { %v763_v11 = vpop.f32.mrf.mxu0 }
 0x312   :  { %781 = vmatmul.mubr.bf16.vlgmr.msra.gmra.mxu1 %v498_v10 }
 0x3d2   :  { %v604_v12 = vpop.f32.mrf.mxu1 }
 0x3d3   :  { %v605_v13 = vadd.f32 %v651_v1, %v604_v12 }
 0x3d4   :  { %v782_v14 = vpop.f32.mrf.mxu1 }
 0x3d5   :  { %611 = vst.msk [vmem:[%s1121_s10] sm:$0xff] %vm610_vm6, %v605_v13 }
 0x3d6   :  { %v607_v15 = vpop.f32.mrf.mxu1 }
 0x3d8   :  { %v783_v16 = vpop.f32.mrf.mxu1 }
 0x3d9   :  { %616 = vsyncpa [#allocation3], 1 }
 0x3da   :  { %617 = vsyncpa [#allocation5], 1 }
 0x3db   :  { %618 = vsyncpa [#allocation8], 1 }

</bundles_post_ra>
